<compile_context>
chip_gen: v6e
topology: v6e:2x2x1
jax: 0.10.0
libtpu: 0.0.40
codegen_flags: <defaults>
</compile_context>

<pallas_src>
import math

import jax
import jax.numpy as jnp
from jax.experimental import pallas as pl
from jax.experimental.pallas import tpu as pltpu


_VMEM_BUDGET = 40 * 1024 * 1024        # conservative: fits v7x 64 MiB physical VMEM
_W_RESIDENT_BYTES = 12 * 1024 * 1024   # single-copy W size before O-axis tiling
_TARGET_STEP_BYTES = 2 * 1024 * 1024   # ~2 MiB of x+out HBM traffic per grid step


def _round_up(x, m):
    return (x + m - 1) // m * m


# ---------------------------------------------------------------------------
# Kernels
# ---------------------------------------------------------------------------
def _td_diag_kernel(x_ref, wdiag_ref, b_ref, o_ref):
    # diag path: z = d * diag(W) + b  -> pure VPU; exp goes to the EUP slot.
    z = (x_ref[...].astype(jnp.float32) * wdiag_ref[...].astype(jnp.float32)
         + b_ref[...].astype(jnp.float32))
    o_ref[...] = jnp.exp(-jnp.maximum(z, 0.0)).astype(o_ref.dtype)


def _td_dense_kernel(x_ref, wt_ref, b_ref, o_ref):
    # dense path: z = d @ W.T + b with W pre-transposed to (I, O) -> NN-form
    # MXU matmul (no in-kernel transpose), f32 accumulation.
    z = jnp.dot(x_ref[...], wt_ref[...], preferred_element_type=jnp.float32)
    z = z + b_ref[...].astype(jnp.float32)
    o_ref[...] = jnp.exp(-jnp.maximum(z, 0.0)).astype(o_ref.dtype)


# ---------------------------------------------------------------------------
# Tiling helpers
# ---------------------------------------------------------------------------
def _pick_batch_tile(B, row_bytes, fixed_bytes, vmem_budget=_VMEM_BUDGET,
                     target_step_bytes=_TARGET_STEP_BYTES):
    """Batch tile: multiple of 8 (or == B), ~target bytes/step, VMEM-bounded,
    and >= 2 grid steps whenever B > 8 so v7x megacore uses both TensorCores."""
    if B <= 8:
        return B                                    # tiny batch: one full block
    tb = target_step_bytes // max(row_bytes, 1)
    # x/out are double-buffered by the pipeline; W/b buffers are in fixed_bytes.
    max_tb = (vmem_budget - fixed_bytes) // max(2 * row_bytes, 1)
    tb = max(8, min(tb, max_tb, B))
    tb = _round_up(tb, 8)
    if tb >= B:                                     # would collapse to 1 step
        tb = _round_up(-(-B // 2), 8)               # ~half the batch; < B for B > 8
    return tb


def _vmem_limit(need_bytes):
    # Raise the scoped-VMEM limit to cover the chosen tiling (+ headroom) while
    # staying well under v7x's 64 MiB physical VMEM (v5e/v6e have 128 MiB).
    return int(min(max(int(1.5 * need_bytes) + (4 << 20), 32 << 20), 56 << 20))


# ---------------------------------------------------------------------------
# Public wrapper
# ---------------------------------------------------------------------------
def temporal_decay(d, W, b, *, diag=False, w_resident_bytes=_W_RESIDENT_BYTES):
    """gamma = exp(-relu(F.linear(d, W [* eye], b))). d:(B,I), W:(O,I), b:(O,)."""
    B, I = d.shape
    O, I_w = W.shape
    assert I_w == I and b.shape == (O,)
    x_sz = jnp.dtype(d.dtype).itemsize
    w_sz = jnp.dtype(W.dtype).itemsize
    b_sz = jnp.dtype(b.dtype).itemsize

    # ---------------- diag=True: elementwise VPU path ----------------------
    if diag:
        assert I == O, "diag=True requires input_size == output_size"
        w_diag = jnp.diagonal(W).reshape(1, I)      # one tiny XLA op, done once
        b2 = b.reshape(1, I)

        fixed = 2 * I * (w_sz + b_sz)               # double-buffered diag + bias
        row_bytes = 2 * I * x_sz                    # one x row + one out row
        TB = _pick_batch_tile(B, row_bytes, fixed)
        vmem_need = fixed + 2 * TB * row_bytes

        cost = pl.CostEstimate(
            flops=2 * B * I,
            transcendentals=B * I,
            bytes_accessed=2 * B * I * x_sz + I * (w_sz + b_sz),
        )
        # TODO(synk): for I < 128 this path is lane-sparse; folding batch rows
        # into lanes would need a layout change of d costing extra HBM traffic.
        return pl.pallas_call(
            _td_diag_kernel,
            out_shape=jax.ShapeDtypeStruct((B, I), d.dtype),
            grid=(pl.cdiv(B, TB),),
            in_specs=[
                pl.BlockSpec((TB, I), lambda i: (i, 0)),   # d: tiled over batch
                pl.BlockSpec((1, I), lambda i: (0, 0)),    # diag(W): resident
                pl.BlockSpec((1, I), lambda i: (0, 0)),    # b: resident
            ],
            out_specs=pl.BlockSpec((TB, I), lambda i: (i, 0)),
            compiler_params=pltpu.CompilerParams(
                dimension_semantics=("parallel",),
                vmem_limit_bytes=_vmem_limit(vmem_need),
            ),
            cost_estimate=cost,
        )(d, w_diag, b2)

    # ---------------- diag=False: MXU matmul path ---------------------------
    Wt = W.T                                        # (I, O): NN form, done once
    b2 = b.reshape(1, O)
    O_pad = O
    if O < 128:                                     # lane-dense output stores
        O_pad = 128
        Wt = jnp.pad(Wt, ((0, 0), (0, O_pad - O)))
        b2 = jnp.pad(b2, ((0, 0), (0, O_pad - O)))  # padded lanes -> exp(0) = 1

    # O-axis tile: whole W resident while small; otherwise 128-multiple tiles
    # (no accumulator / "arbitrary" axis needed).
    if I * O_pad * w_sz <= w_resident_bytes:
        TO = O_pad
    else:
        TO = max(128, (w_resident_bytes // (I * w_sz)) // 128 * 128)
        TO = min(TO, _round_up(O_pad, 128))
    n_o = pl.cdiv(O_pad, TO)

    fixed = 2 * (I * TO * w_sz + TO * b_sz)         # double-buffered W/b tiles
    row_bytes = (I + TO) * x_sz                     # one x row + one out row
    TB = _pick_batch_tile(B, row_bytes, fixed)
    n_b = pl.cdiv(B, TB)
    vmem_need = fixed + 2 * TB * row_bytes

    cost = pl.CostEstimate(
        flops=2 * B * O_pad * I,
        transcendentals=B * O_pad,
        bytes_accessed=(B * I * x_sz + I * O_pad * w_sz + O_pad * b_sz
                        + B * O_pad * x_sz),
    )

    out = pl.pallas_call(
        _td_dense_kernel,
        out_shape=jax.ShapeDtypeStruct((B, O_pad), d.dtype),
        # O axis is the outer grid axis so each (I, TO) W tile is DMA'd once
        # while batch tiles stream under it; both axes are independent.
        grid=(n_o, n_b),
        in_specs=[
            pl.BlockSpec((TB, I), lambda j, i: (i, 0)),    # d: tiled over batch
            pl.BlockSpec((I, TO), lambda j, i: (0, j)),    # W.T: tiled over O
            pl.BlockSpec((1, TO), lambda j, i: (0, j)),    # b: tiled over O
        ],
        out_specs=pl.BlockSpec((TB, TO), lambda j, i: (i, j)),
        compiler_params=pltpu.CompilerParams(
            dimension_semantics=("parallel", "parallel"),
            vmem_limit_bytes=_vmem_limit(vmem_need),
        ),
        cost_estimate=cost,
    )(d, Wt, b2)
    return out[:, :O] if O_pad != O else out


if __name__ == "__main__":
    key = jax.random.PRNGKey(0)
    kd, kw, kb, kd2, kw2, kb2, kd3, kw3, kb3 = jax.random.split(key, 9)

    # --- config 1: matches the module defaults (hidden 32, diag valid) ------
    B, I, O = 8, 32, 32
    stdv = 1.0 / math.sqrt(O)    # reset_parameters(): uniform(-stdv, stdv)
    W = jax.random.uniform(kw, (O, I), jnp.float32, minval=-stdv, maxval=stdv)
    b = jax.random.uniform(kb, (O,), jnp.float32, minval=-stdv, maxval=stdv)
    d = jax.random.uniform(kd, (B, I), jnp.float32)          # time deltas >= 0

    out = jax.block_until_ready(temporal_decay(d, W, b, diag=False))
    ref = jnp.exp(-jnp.maximum(d @ W.T + b, 0.0))
    assert out.shape == (B, O)
    assert jnp.allclose(out, ref, atol=1e-5, rtol=1e-5)

    out_diag = jax.block_until_ready(temporal_decay(d, W, b, diag=True))
    ref_diag = jnp.exp(
        -jnp.maximum(d @ (W * jnp.eye(I, dtype=W.dtype)).T + b, 0.0))
    assert out_diag.shape == (B, O)
    assert jnp.allclose(out_diag, ref_diag, atol=1e-5, rtol=1e-5)

    # --- config 2: multi-step batch grid + lane-padding of a ragged O -------
    B2, I2, O2 = 64, 48, 40
    stdv2 = 1.0 / math.sqrt(O2)
    W2 = jax.random.uniform(kw2, (O2, I2), jnp.float32, minval=-stdv2, maxval=stdv2)
    b2 = jax.random.uniform(kb2, (O2,), jnp.float32, minval=-stdv2, maxval=stdv2)
    d2 = jax.random.uniform(kd2, (B2, I2), jnp.float32)
    out2 = jax.block_until_ready(temporal_decay(d2, W2, b2, diag=False))
    ref2 = jnp.exp(-jnp.maximum(d2 @ W2.T + b2, 0.0))
    assert out2.shape == (B2, O2)
    assert jnp.allclose(out2, ref2, atol=1e-5, rtol=1e-5)

    # --- config 3: force the O-axis (N) grid split with a tiny W budget -----
    B3, I3, O3 = 64, 32, 256
    stdv3 = 1.0 / math.sqrt(O3)
    W3 = jax.random.uniform(kw3, (O3, I3), jnp.float32, minval=-stdv3, maxval=stdv3)
    b3 = jax.random.uniform(kb3, (O3,), jnp.float32, minval=-stdv3, maxval=stdv3)
    d3 = jax.random.uniform(kd3, (B3, I3), jnp.float32)
    out3 = jax.block_until_ready(
        temporal_decay(d3, W3, b3, diag=False, w_resident_bytes=16 * 1024))
    ref3 = jnp.exp(-jnp.maximum(d3 @ W3.T + b3, 0.0))
    assert out3.shape == (B3, O3)
    assert jnp.allclose(out3, ref3, atol=1e-5, rtol=1e-5)

    print("KERNEL_OK")
</pallas_src>

<mosaic_0001>
module attributes {stable_mosaic.version = 11 : i64} {
  func.func @_td_dense_kernel(%arg0: i32, %arg1: i32, %arg2: memref<8x32xf32, #tpu.memory_space<vmem>>, %arg3: memref<32x128xf32, #tpu.memory_space<vmem>>, %arg4: memref<1x128xf32, #tpu.memory_space<vmem>>, %arg5: memref<8x128xf32, #tpu.memory_space<vmem>>) attributes {dimension_semantics = [#tpu.dimension_semantics<parallel>, #tpu.dimension_semantics<parallel>], iteration_bounds = array<i64: 1, 1>, scalar_prefetch = 0 : i64, scratch_operands = 0 : i64, tpu.core_type = #tpu.core_type<tc>, window_params = [{transform_indices = @transform_0, window_bounds = array<i64: 8, 32>}, {transform_indices = @transform_1, window_bounds = array<i64: 32, 128>}, {transform_indices = @transform_2, window_bounds = array<i64: 1, 128>}, {transform_indices = @transform_3, window_bounds = array<i64: 8, 128>}]} {
    %c0 = arith.constant 0 : index
    %c0_0 = arith.constant 0 : index
    %0 = vector.load %arg2[%c0, %c0_0] : memref<8x32xf32, #tpu.memory_space<vmem>>, vector<8x32xf32>
    %c0_1 = arith.constant 0 : index
    %c0_2 = arith.constant 0 : index
    %1 = vector.load %arg3[%c0_1, %c0_2] : memref<32x128xf32, #tpu.memory_space<vmem>>, vector<32x128xf32>
    %cst = arith.constant dense<0.000000e+00> : vector<8x128xf32>
    %2 = tpu.matmul %0, %1, %cst {dimension_numbers = #tpu.dot_dimension_numbers<[1], [0], [0], [1], [0, 0, 1, 1], [], []>} : vector<8x32xf32>, vector<32x128xf32>, vector<8x128xf32> -> vector<8x128xf32>
    %c0_3 = arith.constant 0 : index
    %c0_4 = arith.constant 0 : index
    %3 = vector.load %arg4[%c0_3, %c0_4] : memref<1x128xf32, #tpu.memory_space<vmem>>, vector<1x128xf32>
    %4 = vector.broadcast %3 : vector<1x128xf32> to vector<8x128xf32>
    %5 = arith.addf %2, %4 : vector<8x128xf32>
    %cst_5 = arith.constant 0.000000e+00 : f32
    %6 = vector.broadcast %cst_5 : f32 to vector<8x128xf32>
    %7 = arith.maximumf %5, %6 : vector<8x128xf32>
    %cst_6 = arith.constant 0.000000e+00 : f32
    %8 = vector.broadcast %cst_6 : f32 to vector<8x128xf32>
    %9 = arith.subf %8, %7 : vector<8x128xf32>
    %10 = math.exp %9 : vector<8x128xf32>
    %c0_7 = arith.constant 0 : index
    %c0_8 = arith.constant 0 : index
    %11 = vector.load %arg5[%c0_7, %c0_8] : memref<8x128xf32, #tpu.memory_space<vmem>>, vector<8x128xf32>
    tpu.vector_store %arg5[%c0_7, %c0_8], %10 {strides = array<i32>} : memref<8x128xf32, #tpu.memory_space<vmem>>, vector<8x128xf32>,
    return
  }
  func.func @transform_0(%arg0: i32, %arg1: i32) -> (i32, i32) {
    %c0_i32 = arith.constant 0 : i32
    %c0_i32_0 = arith.constant 0 : i32
    return %arg1, %c0_i32 : i32, i32
  }
  func.func @transform_1(%arg0: i32, %arg1: i32) -> (i32, i32) {
    %c0_i32 = arith.constant 0 : i32
    %c0_i32_0 = arith.constant 0 : i32
    return %c0_i32, %arg0 : i32, i32
  }
  func.func @transform_2(%arg0: i32, %arg1: i32) -> (i32, i32) {
    %c0_i32 = arith.constant 0 : i32
    %c0_i32_0 = arith.constant 0 : i32
    return %c0_i32, %arg0 : i32, i32
  }
  func.func @transform_3(%arg0: i32, %arg1: i32) -> (i32, i32) {
    %c0_i32 = arith.constant 0 : i32
    return %arg1, %arg0 : i32, i32
  }
}

</mosaic_0001>

<bundles_post_ra>
// kernel: tpu_custom_call.1
= control target key start
LH: loop header
LB: loop body
LE: loop exit
PB: predicated region body
PF: predicated region fallthrough
CT: control target
= control target key end

     0   :  { %8 = vsyncpa [#allocation3], 0  ;;  %s280_s0 = inlined_call_operand.hbm [shape: f32[8,32], index: 0, kind: input, shape index: {}]   ;;  %s281_s1 = inlined_call_operand.hbm [shape: f32[32,128], index: 1, kind: input, shape index: {}]   ;;  %s282_s2 = inlined_call_operand.vmem [shape: f32[1,128], index: 2, kind: input, shape index: {}]   ;;  %s283_s3 = inlined_call_operand.hbm [shape: f32[8,128], index: 3, kind: output, shape index: {}]  }
   0x1   :  { %9 = vsyncpa [#allocation6], 0 }
   0x2   :  { %10 = vsyncpa [#allocation4], 0  ;;  %s241_s12 = smov [#allocation2]   ;;  %s242_s14 = smov [#allocation5]  }
   0x3   :  { %s17_s13 = sshll.u32 %s241_s12, 4  ;;  %s26_s15 = sshll.u32 %s242_s14, 4  ;;  %s18_s13 = int_to_ptr.vmem [resolvable:$true] %s17_s13  ;;  %s27_s15 = int_to_ptr.vmem [resolvable:$true] %s26_s15 }
   0x4   :  { %s183_s16 = scalar_lea.vmem %s18_s13, 128  ;;  %p188_p1 = scmp.lt.s32.totalorder %s18_s13, %s18_s13 }
   0x5   :  { %p184_p0 = scmp.ne.s32.totalorder %s18_s13, %s183_s16  ;;  %p189_p2 = scmp.lt.s32.totalorder %s183_s16, %s183_s16 }
   0x7   :  { %p190_p3 = por %p189_p2, %p188_p1 }
   0x9   :  { %p191_p4 = pnand %p190_p3, %p184_p0 }
   0xb   :  { %194 = shalt.err (!%p191_p4)
}
   0xc   :  { %20 = dma.hbm_to_vmem [thread:$0]  %s280_s0, 128, %s18_s13, [#allocation3]  }
   0xd   :  { %s203_s19 = scalar_lea.vmem %s27_s15, 512  ;;  %p208_p6 = scmp.lt.s32.totalorder %s27_s15, %s27_s15 }
   0xe   :  { %p204_p5 = scmp.ne.s32.totalorder %s27_s15, %s203_s19  ;;  %p209_p7 = scmp.lt.s32.totalorder %s203_s19, %s203_s19 }
  0x10   :  { %p210_p8 = por %p209_p7, %p208_p6 }
  0x12   :  { %p211_p9 = pnand %p210_p8, %p204_p5 }
  0x14   :  { %214 = shalt.err (!%p211_p9)
}
  0x15   :  { %s243_s20 = smov 128   ;;  %s244_s21 = smov 8  }
  0x16   :  { %32 = dma.hbm_to_vmem [thread:$0]  %s281_s1, 512, %s27_s15, [#allocation6], %s243_s20, %s243_s20, %s244_s21  }
  0x17   :  { %235 = dma.done.wait [#allocation3], 128  }
  0x18   :  { %236 = vsyncadd [#allocation3], 4294967168 }
  0x19   :  { %237 = dma.done.wait [#allocation6], 512  }
  0x1a   :  { %238 = vsyncadd [#allocation6], 4294966784  ;;  %v245_v0 = vmov 0.0   ;;  %vm246_vm0 = vmmov 0   ;;  %v45_v1 = vld [vmem:[#allocation5 + $0x18] sm:$0xff]  ;;  %v44_v2 = vld [vmem:[#allocation5 + $0x10] sm:$0xff] }
  0x1b   :  { %155 = vmatprep.subr.mxu0 %v245_v0  ;;  %163 = vmatprep.mubr.msk.f32.mxu0 %vm246_vm0, %v245_v0  ;;  %v43_v3 = vld [vmem:[#allocation5 + $0x8] sm:$0xff]  ;;  %v42_v4 = vld [vmem:[#allocation5] sm:$0xff]  ;;  %v41_v5 = vld [vmem:[#allocation2] sm:$0xff]  ;;  %vm53_vm1 = vcmask 261120   ;;  %s247_s24 = smov [#allocation7]  }
  0x1c   :  { %156 = vmatpush3.msra.mxu0 %v45_v1  ;;  %v148_v6 = vld [vmem:[%s282_s2] ss:$0 sm:$0xff]  ;;  %s138_s25 = sshll.u32 %s247_s24, 4  ;;  %s139_s25 = int_to_ptr.vmem [resolvable:$true] %s138_s25 }
  0x1d   :  { %157 = vmatprep.subr.mxu0 %v245_v0  ;;  %s215_s26 = scalar_lea.vmem %s139_s25, 128  ;;  %p220_p11 = scmp.lt.s32.totalorder %s139_s25, %s139_s25 }
  0x1e   :  { %158 = vmatpush3.msra.mxu0 %v44_v2  ;;  %p216_p10 = scmp.ne.s32.totalorder %s139_s25, %s215_s26  ;;  %p221_p12 = scmp.lt.s32.totalorder %s215_s26, %s215_s26 }
  0x1f   :  { %159 = vmatprep.subr.mxu0 %v245_v0 }
  0x20   :  { %160 = vmatpush3.msra.mxu0 %v43_v3  ;;  %p222_p13 = por %p221_p12, %p220_p11 }
  0x21   :  { %161 = vmatprep.subr.mxu0 %v245_v0 }
  0x22   :  { %162 = vmatpush3.msra.mxu0 %v42_v4  ;;  %p223_p0 = pnand %p222_p13, %p216_p10 }
  0x23   :  { %164 = vmatmul.mubr.msk.f32.vlgmr.msra.gmra.mxu0 %vm53_vm1, %v41_v5 }
  0xe3   :  { %v123_v7 = vpop.f32.mrf.mxu0 }
  0xe4   :  { %v124_v8 = vadd.f32 %v148_v6, %v123_v7 }
  0xe5   :  { %v165_v9 = vpop.f32.mrf.mxu0 }
  0xe6   :  { %v127_v10 = vmax.f32 %v124_v8, 0.0 }
  0xe8   :  { %v128_v11 = vsub.f32 0.0, %v127_v10 }
  0xea   :  { %v129_v12 = vmul.f32 1.442695, %v128_v11 }
  0xec   :  { %173 = vpow2.f32 %v129_v12 }
  0xf9   :  { %v174_v13 = vpop.eup %173 }
  0xfa   :  { %131 = vst [vmem:[#allocation7] sm:$0xff] %v174_v13 }
  0xfb   :  { %226 = shalt.err (!%p223_p0)
}
  0xfc   :  { %141 = dma.vmem_to_hbm [thread:$0]  %s139_s25, 128, %s283_s3, [#allocation4]  }
  0xfd   :  { %239 = dma.done.wait [#allocation4], 128  }
  0xfe   :  { %240 = vsyncadd [#allocation4], 4294967168 }
  0xff   :  { %145 = vsyncpa [#allocation3], 1 }
 0x100   :  { %146 = vsyncpa [#allocation6], 1 }
 0x101   :  { %147 = vsyncpa [#allocation4], 1 }

</bundles_post_ra>
